<compile_context>
chip_gen: v7x
topology: tpu7x:2x2x1
jax: 0.10.0
libtpu: 0.0.40
codegen_flags: <defaults>
</compile_context>

<pallas_src>
import jax
import jax.numpy as jnp
from jax.experimental import pallas as pl
from jax.experimental.pallas import tpu as pltpu

HID = 16          # hidden width of the original torch module
LANE = 128        # TPU lane width / hidden-dim padding quantum
MAX_TB = 4096     # cap on batch-tile rows (keeps VMEM tiny, steps >= ~1 MiB)
MIN_TILES = 4     # aim for >= 4 grid steps (v7x megacore + pipeline overlap)


def _round_up(n, m):
    return ((n + m - 1) // m) * m


def mlp_kernel(x_ref,
               w1_ref, b1_ref,
               w2_ref, b2_ref,
               w3_ref, b3_ref,
               w4_ref, b4_ref,
               o_ref):
    """Fused forward for one (tb, input_size) batch tile.

    x_ref is f32 (cast to bf16 here, right before the MXU); w*_ref are bf16;
    b*_ref / o_ref are f32.  Dots accumulate in f32; bias add + ReLU run in
    f32 on the VPU (no bf16 elementwise — v5e-safe).
    """
    x = x_ref[...].astype(jnp.bfloat16)                      # (tb, in)

    # Layer 1: Linear + ReLU   -> (tb, 128)
    h = jnp.dot(x, w1_ref[...], preferred_element_type=jnp.float32) + b1_ref[...]
    h = jnp.maximum(h, 0.0)

    # Layer 2: Linear + ReLU
    h = jnp.dot(h.astype(jnp.bfloat16), w2_ref[...],
                preferred_element_type=jnp.float32) + b2_ref[...]
    h = jnp.maximum(h, 0.0)

    # Layer 3: Linear + ReLU
    h = jnp.dot(h.astype(jnp.bfloat16), w3_ref[...],
                preferred_element_type=jnp.float32) + b3_ref[...]
    h = jnp.maximum(h, 0.0)

    # Output layer: Linear (no activation) -> (tb, output_size)
    y = jnp.dot(h.astype(jnp.bfloat16), w4_ref[...],
                preferred_element_type=jnp.float32) + b4_ref[...]

    o_ref[...] = y.astype(o_ref.dtype)


def _pad2(a, rows, cols):
    return jnp.pad(a, ((0, rows - a.shape[0]), (0, cols - a.shape[1])))


def _padded_params(params):
    """Pad hidden dims of weights/biases to 128 lanes; weights cast to bf16.

    Input feature dim (W1 rows) and output feature dim (W4 cols, b4) are left
    UNPADDED — their blocks use the full array dim, which is legal and avoids
    padded HBM traffic.  Zero padding is exact for Linear + ReLU.
    """
    (w1, b1), (w2, b2), (w3, b3), (w4, b4) = params
    in_sz = w1.shape[0]
    out_sz = w4.shape[1]
    hid_p = _round_up(HID, LANE)

    w1p = _pad2(w1, in_sz, hid_p).astype(jnp.bfloat16)       # (in,   128)
    w2p = _pad2(w2, hid_p, hid_p).astype(jnp.bfloat16)       # (128,  128)
    w3p = _pad2(w3, hid_p, hid_p).astype(jnp.bfloat16)       # (128,  128)
    w4p = _pad2(w4, hid_p, out_sz).astype(jnp.bfloat16)      # (128,  out)
    b1p = _pad2(b1.reshape(1, -1), 1, hid_p).astype(jnp.float32)
    b2p = _pad2(b2.reshape(1, -1), 1, hid_p).astype(jnp.float32)
    b3p = _pad2(b3.reshape(1, -1), 1, hid_p).astype(jnp.float32)
    b4p = b4.reshape(1, -1).astype(jnp.float32)              # (1, out) unpadded
    return (w1p, b1p, w2p, b2p, w3p, b3p, w4p, b4p)


def mlp_forward(x, params):
    """x: (batch, input_size) f32; params: list of (W (in,out) f32, b (out,) f32)."""
    batch, input_size = x.shape
    output_size = params[3][0].shape[1]
    hid_p = _round_up(HID, LANE)

    # Batch tile: multiple of 8 (sublane), derived from batch so that large
    # batches get >= MIN_TILES grid steps (v7x: both TCs) with small tail pad,
    # capped at MAX_TB for step granularity / VMEM.
    tb = _round_up(max(1, pl.cdiv(batch, MIN_TILES)), 8)
    tb = max(8, min(tb, MAX_TB))
    b_p = _round_up(batch, tb)
    n_tiles = b_p // tb

    # Only the batch (row) dim may need padding; feature dims stay exact.
    x_in = x if b_p == batch else jnp.pad(x, ((0, b_p - batch), (0, 0)))

    w1p, b1p, w2p, b2p, w3p, b3p, w4p, b4p = _padded_params(params)

    # Resident (non-pipelined-index) operands: full-array blocks, constant map.
    full = lambda a: pl.BlockSpec(a.shape, lambda i: (0,) * a.ndim)

    # Advisory cost estimate with TRUE (unpadded) dims.
    flops = 2 * batch * (input_size * HID + 2 * HID * HID + HID * output_size)
    bytes_accessed = (
        batch * input_size * 4 + batch * output_size * 4            # x in + out (f32)
        + (input_size * hid_p + 2 * hid_p * hid_p + hid_p * output_size) * 2  # W bf16
        + (3 * hid_p + output_size) * 4                              # biases f32
    )

    out = pl.pallas_call(
        mlp_kernel,
        out_shape=jax.ShapeDtypeStruct((b_p, output_size), jnp.float32),
        grid=(n_tiles,),
        in_specs=[
            pl.BlockSpec((tb, input_size), lambda i: (i, 0)),   # x tile, pipelined
            full(w1p), full(b1p),
            full(w2p), full(b2p),
            full(w3p), full(b3p),
            full(w4p), full(b4p),
        ],
        out_specs=pl.BlockSpec((tb, output_size), lambda i: (i, 0)),
        compiler_params=pltpu.CompilerParams(
            dimension_semantics=("parallel",),
            # Usage is small even at tb=MAX_TB (<~4 MiB); 32 MiB is safe on
            # v5e/v6e (128 MiB) and v7x (64 MiB).
            vmem_limit_bytes=32 * 1024 * 1024,
        ),
        cost_estimate=pl.CostEstimate(
            flops=int(flops), transcendentals=0,
            bytes_accessed=int(bytes_accessed)),
    )(x_in, w1p, b1p, w2p, b2p, w3p, b3p, w4p, b4p)

    return out[:batch]


def xavier_uniform(key, fan_in, fan_out):
    # torch.nn.init.xavier_uniform_ (gain=1): U(-a, a), a = sqrt(6/(fan_in+fan_out))
    a = jnp.sqrt(6.0 / (fan_in + fan_out))
    # Stored as (in, out) so the kernel computes y = x @ W + b (torch stores (out, in)).
    return jax.random.uniform(key, (fan_in, fan_out), jnp.float32, -a, a)


def init_mlp_params(key, input_size, output_size):
    dims = [(input_size, HID), (HID, HID), (HID, HID), (HID, output_size)]
    params = []
    for fi, fo in dims:
        key, kw, kb = jax.random.split(key, 3)
        w = xavier_uniform(kw, fi, fo)
        # PyTorch default bias init: U(-1/sqrt(fan_in), 1/sqrt(fan_in))
        bound = 1.0 / jnp.sqrt(float(fi))
        b = jax.random.uniform(kb, (fo,), jnp.float32, -bound, bound)
        params.append((w, b))
    return params


def mlp_reference(x, params):
    """Plain-JAX reference mirroring the kernel's bf16-MXU / f32-accumulate math."""
    h = x
    for i, (w, b) in enumerate(params):
        h = jnp.dot(h.astype(jnp.bfloat16), w.astype(jnp.bfloat16),
                    preferred_element_type=jnp.float32) + b
        if i < len(params) - 1:
            h = jnp.maximum(h, 0.0)
    return h


if __name__ == "__main__":
    key = jax.random.PRNGKey(0)
    input_size, output_size = 32, 4
    k_x, k_x2, k_p = jax.random.split(key, 3)
    params = init_mlp_params(k_p, input_size, output_size)

    # Small demo batch (single tile).
    x = jax.random.normal(k_x, (8, input_size), jnp.float32)
    out = jax.block_until_ready(mlp_forward(x, params))
    ref = mlp_reference(x, params)
    assert out.shape == (8, output_size)
    assert jnp.allclose(out, ref, atol=1e-4, rtol=1e-4), "mismatch vs reference (small batch)"

    # Ragged larger batch: exercises the pipelined batch grid (4 tiles) + tail padding.
    x2 = jax.random.normal(k_x2, (1040, input_size), jnp.float32)
    out2 = jax.block_until_ready(mlp_forward(x2, params))
    ref2 = mlp_reference(x2, params)
    assert out2.shape == (1040, output_size)
    assert jnp.allclose(out2, ref2, atol=1e-4, rtol=1e-4), "mismatch vs reference (grid batch)"

    print("KERNEL_OK")
</pallas_src>

<mosaic_0001>
module attributes {stable_mosaic.version = 11 : i64} {
  func.func @mlp_kernel(%arg0: i32, %arg1: memref<8x32xf32, #tpu.memory_space<vmem>>, %arg2: memref<32x128xbf16, #tpu.memory_space<vmem>>, %arg3: memref<1x128xf32, #tpu.memory_space<vmem>>, %arg4: memref<128x128xbf16, #tpu.memory_space<vmem>>, %arg5: memref<1x128xf32, #tpu.memory_space<vmem>>, %arg6: memref<128x128xbf16, #tpu.memory_space<vmem>>, %arg7: memref<1x128xf32, #tpu.memory_space<vmem>>, %arg8: memref<128x4xbf16, #tpu.memory_space<vmem>>, %arg9: memref<1x4xf32, #tpu.memory_space<vmem>>, %arg10: memref<8x4xf32, #tpu.memory_space<vmem>>) attributes {dimension_semantics = [#tpu.dimension_semantics<parallel>], iteration_bounds = array<i64: 1>, scalar_prefetch = 0 : i64, scratch_operands = 0 : i64, tpu.core_type = #tpu.core_type<tc>, window_params = [{transform_indices = @transform_0, window_bounds = array<i64: 8, 32>}, {pipeline_mode = #tpu.pipeline_mode<synchronous>, transform_indices = @transform_1, window_bounds = array<i64: 32, 128>}, {pipeline_mode = #tpu.pipeline_mode<synchronous>, transform_indices = @transform_2, window_bounds = array<i64: 1, 128>}, {pipeline_mode = #tpu.pipeline_mode<synchronous>, transform_indices = @transform_3, window_bounds = array<i64: 128, 128>}, {pipeline_mode = #tpu.pipeline_mode<synchronous>, transform_indices = @transform_4, window_bounds = array<i64: 1, 128>}, {pipeline_mode = #tpu.pipeline_mode<synchronous>, transform_indices = @transform_5, window_bounds = array<i64: 128, 128>}, {pipeline_mode = #tpu.pipeline_mode<synchronous>, transform_indices = @transform_6, window_bounds = array<i64: 1, 128>}, {pipeline_mode = #tpu.pipeline_mode<synchronous>, transform_indices = @transform_7, window_bounds = array<i64: 128, 4>}, {pipeline_mode = #tpu.pipeline_mode<synchronous>, transform_indices = @transform_8, window_bounds = array<i64: 1, 4>}, {transform_indices = @transform_9, window_bounds = array<i64: 8, 4>}]} {
    %c0 = arith.constant 0 : index
    %c0_0 = arith.constant 0 : index
    %0 = vector.load %arg1[%c0, %c0_0] : memref<8x32xf32, #tpu.memory_space<vmem>>, vector<8x32xf32>
    %1 = arith.truncf %0 : vector<8x32xf32> to vector<8x32xbf16>
    %c0_1 = arith.constant 0 : index
    %c0_2 = arith.constant 0 : index
    %2 = vector.load %arg2[%c0_1, %c0_2] : memref<32x128xbf16, #tpu.memory_space<vmem>>, vector<32x128xbf16>
    %cst = arith.constant dense<0.000000e+00> : vector<8x128xf32>
    %3 = tpu.matmul %1, %2, %cst {dimension_numbers = #tpu.dot_dimension_numbers<[1], [0], [0], [1], [0, 0, 1, 1], [], []>} : vector<8x32xbf16>, vector<32x128xbf16>, vector<8x128xf32> -> vector<8x128xf32>
    %c0_3 = arith.constant 0 : index
    %c0_4 = arith.constant 0 : index
    %4 = vector.load %arg3[%c0_3, %c0_4] : memref<1x128xf32, #tpu.memory_space<vmem>>, vector<1x128xf32>
    %5 = vector.broadcast %4 : vector<1x128xf32> to vector<8x128xf32>
    %6 = arith.addf %3, %5 : vector<8x128xf32>
    %cst_5 = arith.constant 0.000000e+00 : f32
    %7 = vector.broadcast %cst_5 : f32 to vector<8x128xf32>
    %8 = arith.maximumf %6, %7 : vector<8x128xf32>
    %9 = arith.truncf %8 : vector<8x128xf32> to vector<8x128xbf16>
    %c0_6 = arith.constant 0 : index
    %c0_7 = arith.constant 0 : index
    %10 = vector.load %arg4[%c0_6, %c0_7] : memref<128x128xbf16, #tpu.memory_space<vmem>>, vector<128x128xbf16>
    %cst_8 = arith.constant dense<0.000000e+00> : vector<8x128xf32>
    %11 = tpu.matmul %9, %10, %cst_8 {dimension_numbers = #tpu.dot_dimension_numbers<[1], [0], [0], [1], [0, 0, 1, 1], [], []>} : vector<8x128xbf16>, vector<128x128xbf16>, vector<8x128xf32> -> vector<8x128xf32>
    %c0_9 = arith.constant 0 : index
    %c0_10 = arith.constant 0 : index
    %12 = vector.load %arg5[%c0_9, %c0_10] : memref<1x128xf32, #tpu.memory_space<vmem>>, vector<1x128xf32>
    %13 = vector.broadcast %12 : vector<1x128xf32> to vector<8x128xf32>
    %14 = arith.addf %11, %13 : vector<8x128xf32>
    %cst_11 = arith.constant 0.000000e+00 : f32
    %15 = vector.broadcast %cst_11 : f32 to vector<8x128xf32>
    %16 = arith.maximumf %14, %15 : vector<8x128xf32>
    %17 = arith.truncf %16 : vector<8x128xf32> to vector<8x128xbf16>
    %c0_12 = arith.constant 0 : index
    %c0_13 = arith.constant 0 : index
    %18 = vector.load %arg6[%c0_12, %c0_13] : memref<128x128xbf16, #tpu.memory_space<vmem>>, vector<128x128xbf16>
    %cst_14 = arith.constant dense<0.000000e+00> : vector<8x128xf32>
    %19 = tpu.matmul %17, %18, %cst_14 {dimension_numbers = #tpu.dot_dimension_numbers<[1], [0], [0], [1], [0, 0, 1, 1], [], []>} : vector<8x128xbf16>, vector<128x128xbf16>, vector<8x128xf32> -> vector<8x128xf32>
    %c0_15 = arith.constant 0 : index
    %c0_16 = arith.constant 0 : index
    %20 = vector.load %arg7[%c0_15, %c0_16] : memref<1x128xf32, #tpu.memory_space<vmem>>, vector<1x128xf32>
    %21 = vector.broadcast %20 : vector<1x128xf32> to vector<8x128xf32>
    %22 = arith.addf %19, %21 : vector<8x128xf32>
    %cst_17 = arith.constant 0.000000e+00 : f32
    %23 = vector.broadcast %cst_17 : f32 to vector<8x128xf32>
    %24 = arith.maximumf %22, %23 : vector<8x128xf32>
    %25 = arith.truncf %24 : vector<8x128xf32> to vector<8x128xbf16>
    %c0_18 = arith.constant 0 : index
    %c0_19 = arith.constant 0 : index
    %26 = vector.load %arg8[%c0_18, %c0_19] : memref<128x4xbf16, #tpu.memory_space<vmem>>, vector<128x4xbf16>
    %cst_20 = arith.constant dense<0.000000e+00> : vector<8x4xf32>
    %27 = tpu.matmul %25, %26, %cst_20 {dimension_numbers = #tpu.dot_dimension_numbers<[1], [0], [0], [1], [0, 0, 1, 1], [], []>} : vector<8x128xbf16>, vector<128x4xbf16>, vector<8x4xf32> -> vector<8x4xf32>
    %c0_21 = arith.constant 0 : index
    %c0_22 = arith.constant 0 : index
    %28 = vector.load %arg9[%c0_21, %c0_22] : memref<1x4xf32, #tpu.memory_space<vmem>>, vector<1x4xf32>
    %29 = vector.broadcast %28 : vector<1x4xf32> to vector<8x4xf32>
    %30 = arith.addf %27, %29 : vector<8x4xf32>
    %c0_23 = arith.constant 0 : index
    %c0_24 = arith.constant 0 : index
    %31 = vector.load %arg10[%c0_23, %c0_24] : memref<8x4xf32, #tpu.memory_space<vmem>>, vector<8x4xf32>
    tpu.vector_store %arg10[%c0_23, %c0_24], %30 {strides = array<i32>} : memref<8x4xf32, #tpu.memory_space<vmem>>, vector<8x4xf32>,
    return
  }
  func.func @transform_0(%arg0: i32) -> (i32, i32) {
    %c0_i32 = arith.constant 0 : i32
    %c0_i32_0 = arith.constant 0 : i32
    return %arg0, %c0_i32 : i32, i32
  }
  func.func @transform_1(%arg0: i32) -> (i32, i32) {
    %c0_i32 = arith.constant 0 : i32
    %c0_i32_0 = arith.constant 0 : i32
    %c0_i32_1 = arith.constant 0 : i32
    return %c0_i32, %c0_i32_0 : i32, i32
  }
  func.func @transform_2(%arg0: i32) -> (i32, i32) {
    %c0_i32 = arith.constant 0 : i32
    %c0_i32_0 = arith.constant 0 : i32
    %c0_i32_1 = arith.constant 0 : i32
    return %c0_i32, %c0_i32_0 : i32, i32
  }
  func.func @transform_3(%arg0: i32) -> (i32, i32) {
    %c0_i32 = arith.constant 0 : i32
    %c0_i32_0 = arith.constant 0 : i32
    %c0_i32_1 = arith.constant 0 : i32
    return %c0_i32, %c0_i32_0 : i32, i32
  }
  func.func @transform_4(%arg0: i32) -> (i32, i32) {
    %c0_i32 = arith.constant 0 : i32
    %c0_i32_0 = arith.constant 0 : i32
    %c0_i32_1 = arith.constant 0 : i32
    return %c0_i32, %c0_i32_0 : i32, i32
  }
  func.func @transform_5(%arg0: i32) -> (i32, i32) {
    %c0_i32 = arith.constant 0 : i32
    %c0_i32_0 = arith.constant 0 : i32
    %c0_i32_1 = arith.constant 0 : i32
    return %c0_i32, %c0_i32_0 : i32, i32
  }
  func.func @transform_6(%arg0: i32) -> (i32, i32) {
    %c0_i32 = arith.constant 0 : i32
    %c0_i32_0 = arith.constant 0 : i32
    %c0_i32_1 = arith.constant 0 : i32
    return %c0_i32, %c0_i32_0 : i32, i32
  }
  func.func @transform_7(%arg0: i32) -> (i32, i32) {
    %c0_i32 = arith.constant 0 : i32
    %c0_i32_0 = arith.constant 0 : i32
    %c0_i32_1 = arith.constant 0 : i32
    return %c0_i32, %c0_i32_0 : i32, i32
  }
  func.func @transform_8(%arg0: i32) -> (i32, i32) {
    %c0_i32 = arith.constant 0 : i32
    %c0_i32_0 = arith.constant 0 : i32
    %c0_i32_1 = arith.constant 0 : i32
    return %c0_i32, %c0_i32_0 : i32, i32
  }
  func.func @transform_9(%arg0: i32) -> (i32, i32) {
    %c0_i32 = arith.constant 0 : i32
    %c0_i32_0 = arith.constant 0 : i32
    return %arg0, %c0_i32 : i32, i32
  }
}

</mosaic_0001>

<bundles_post_ra>
// kernel: tpu_custom_call.1
= control target key start
LH: loop header
LB: loop body
LE: loop exit
PB: predicated region body
PF: predicated region fallthrough
CT: control target
= control target key end

     0   :  { %14 = vsyncpa [#allocation3], 0  ;;  %s866_s0 = inlined_call_operand.vmem [shape: f32[8,32], index: 0, kind: input, shape index: {}]   ;;  %s867_s1 = inlined_call_operand.hbm [shape: bf16[32,128], index: 1, kind: input, shape index: {}]   ;;  %s868_s2 = inlined_call_operand.vmem [shape: f32[1,128], index: 2, kind: input, shape index: {}]   ;;  %s869_s3 = inlined_call_operand.vmem [shape: bf16[128,128], index: 3, kind: input, shape index: {}]   ;;  %s870_s4 = inlined_call_operand.vmem [shape: f32[1,128], index: 4, kind: input, shape index: {}]   ;;  %s871_s5 = inlined_call_operand.hbm [shape: bf16[128,128], index: 5, kind: input, shape index: {}]   ;;  %s872_s6 = inlined_call_operand.vmem [shape: f32[1,128], index: 6, kind: input, shape index: {}]   ;;  %s873_s7 = inlined_call_operand.vmem [shape: bf16[128,4], index: 7, kind: input, shape index: {}]   ;;  %s874_s8 = inlined_call_operand.vmem [shape: f32[1,4], index: 8, kind: input, shape index: {}]   ;;  %s875_s9 = inlined_call_operand.vmem [shape: f32[8,4], index: 9, kind: output, shape index: {}]  }
   0x1   :  { %15 = vsyncpa [#allocation5], 0  ;;  %s686_s30 = smov [#allocation2]   ;;  %s638_s13 = scalar_lea.hbm %s867_s1, 256 }
   0x2   :  { %s23_s10 = sshll.u32 %s686_s30, 4  ;;  %p639_p0 = scmp.ne.s32.totalorder %s867_s1, %s638_s13  ;;  %s24_s10 = int_to_ptr.vmem [resolvable:$true] %s23_s10 }
   0x3   :  { %p642_p1 = scmp.lt.u32.totalorder %s638_s13, %s867_s1 }
   0x5   :  { %p644_p2 = pnand %p642_p1, %p639_p0 }
   0x7   :  { %647 = shalt.err (!%p644_p2)
}
   0x8   :  { %s648_s18 = scalar_lea.vmem %s24_s10, 256  ;;  %p653_p4 = scmp.lt.s32.totalorder %s24_s10, %s24_s10 }
   0x9   :  { %p649_p3 = scmp.ne.s32.totalorder %s24_s10, %s648_s18  ;;  %p654_p5 = scmp.lt.s32.totalorder %s648_s18, %s648_s18 }
   0xb   :  { %p655_p6 = por %p654_p5, %p653_p4 }
   0xd   :  { %p656_p7 = pnand %p655_p6, %p649_p3 }
   0xf   :  { %659 = shalt.err (!%p656_p7)
}
  0x10   :  { %s687_s19 = smov 64   ;;  %s688_s20 = smov 4  }
  0x11   :  { %29 = dma.hbm_to_vmem [thread:$0]  %s867_s1, 256, %s24_s10, [#allocation3], %s687_s19, %s687_s19, %s688_s20  }
  0x12   :  { %s689_s23 = smov [#allocation4]   ;;  %s660_s27 = scalar_lea.hbm %s871_s5, 1024 }
  0x13   :  { %s41_s24 = sshll.u32 %s689_s23, 4  ;;  %p661_p8 = scmp.ne.s32.totalorder %s871_s5, %s660_s27  ;;  %s42_s24 = int_to_ptr.vmem [resolvable:$true] %s41_s24 }
  0x14   :  { %p664_p9 = scmp.lt.u32.totalorder %s660_s27, %s871_s5 }
  0x16   :  { %p666_p10 = pnand %p664_p9, %p661_p8 }
  0x18   :  { %669 = shalt.err (!%p666_p10)
}
  0x19   :  { %s670_s12 = scalar_lea.vmem %s42_s24, 1024  ;;  %p675_p12 = scmp.lt.s32.totalorder %s42_s24, %s42_s24 }
  0x1a   :  { %p671_p11 = scmp.ne.s32.totalorder %s42_s24, %s670_s12  ;;  %p676_p13 = scmp.lt.s32.totalorder %s670_s12, %s670_s12 }
  0x1c   :  { %p677_p0 = por %p676_p13, %p675_p12 }
  0x1e   :  { %p678_p1 = pnand %p677_p0, %p671_p11 }
  0x20   :  { %681 = shalt.err (!%p678_p1)
}
  0x21   :  { %47 = dma.hbm_to_vmem [thread:$0]  %s871_s5, 1024, %s42_s24, [#allocation5], %s687_s19, %s687_s19, %s688_s20  }
  0x22   :  { %682 = dma.done.wait [#allocation3], 256  }
  0x23   :  { %683 = vsyncadd [#allocation3], 4294967040 }
  0x24   :  { %684 = dma.done.wait [#allocation5], 1024  }
  0x25   :  { %685 = vsyncadd [#allocation5], 4294966272  ;;  %v690_v0 = vmov 0.0   ;;  %vm691_vm0 = vmmov 0   ;;  %v612_v1 = vld [vmem:[#allocation2] sm:$0xff]   ;;  %v613_v2 = vld [vmem:[#allocation2 + $0x8] sm:$0xff]  }
  0x26   :  { %538 = vmatprep.subr.bf16.mxu0 %v690_v0  ;;  %542 = vmatprep.mubr.msk.bf16.mxu0 %vm691_vm0, %v690_v0  ;;  %v61_v3 = vld [vmem:[%s866_s0] sm:$0xff]  ;;  %v615_v6 = vld [vmem:[%s869_s3 + $0x8] sm:$0xff]   ;;  %vm86_vm1 = vcmask 261120   ;;  %v616_v7 = vld [vmem:[%s869_s3 + $0x10] sm:$0xff]   ;;  %vm469_vm2 = vcmask 31744  }
  0x27   :  { %546 = vmatprep.subr.bf16.mxu1 %v690_v0  ;;  %562 = vmatprep.mubr.msk.bf16.mxu1 %vm691_vm0, %v690_v0  ;;  %v614_v4 = vld [vmem:[%s869_s3] sm:$0xff]   ;;  %v62_v5 = vpack.c.bf16 %v61_v3, %v61_v3  ;;  %v617_v8 = vld [vmem:[%s869_s3 + $0x18] sm:$0xff]   ;;  %v619_v10 = vld [vmem:[%s869_s3 + $0x28] sm:$0xff]  }
  0x28   :  { %539 = vmatpush3.bf16.msra.mxu0 %v612_v1  ;;  %547 = vmatpush3.bf16.msra.mxu1 %v614_v4  ;;  %v618_v9 = vld [vmem:[%s869_s3 + $0x20] sm:$0xff]   ;;  %v620_v11 = vld [vmem:[%s869_s3 + $0x30] sm:$0xff]   ;;  %v621_v12 = vld [vmem:[%s869_s3 + $0x38] sm:$0xff]  }
  0x29   :  { %540 = vmatprep.subr.bf16.mxu0 %v690_v0  ;;  %548 = vmatprep.subr.bf16.mxu1 %v690_v0  ;;  %v622_v13 = vld [vmem:[#allocation4] sm:$0xff]   ;;  %v623_v14 = vld [vmem:[#allocation4 + $0x8] sm:$0xff]   ;;  %v624_v15 = vld [vmem:[#allocation4 + $0x10] sm:$0xff]  }
  0x2a   :  { %v625_v16 = vld [vmem:[#allocation4 + $0x18] sm:$0xff]   ;;  %v626_v17 = vld [vmem:[#allocation4 + $0x20] sm:$0xff]   ;;  %v627_v18 = vld [vmem:[#allocation4 + $0x28] sm:$0xff]  }
  0x2b   :  { %v477_v19 = vld [vmem:[%s868_s2] ss:$0 sm:$0xff]  ;;  %v629_v28 = vld [vmem:[#allocation4 + $0x38] sm:$0xff]   ;;  %v632_v31 = vld [vmem:[%s873_s7 + $0x10] sm:$0xff]  }
  0x2c   :  { %541 = vmatpush3.bf16.msra.mxu0 %v613_v2  ;;  %549 = vmatpush3.bf16.msra.mxu1 %v615_v6  ;;  %v628_v27 = vld [vmem:[#allocation4 + $0x30] sm:$0xff]   ;;  %v631_v30 = vld [vmem:[%s873_s7 + $0x8] sm:$0xff]   ;;  %v633_v32 = vld [vmem:[%s873_s7 + $0x18] sm:$0xff]  }
  0x2d   :  { %566 = vmatprep.subr.bf16.mxu0 %v690_v0  ;;  %550 = vmatprep.subr.bf16.mxu1 %v690_v0  ;;  %v630_v29 = vld [vmem:[%s873_s7] sm:$0xff]   ;;  %v635_v34 = vld [vmem:[%s873_s7 + $0x28] sm:$0xff]   ;;  %v636_v43 = vld [vmem:[%s873_s7 + $0x30] sm:$0xff]  }
  0x2e   :  { %v634_v33 = vld [vmem:[%s873_s7 + $0x20] sm:$0xff]   ;;  %v637_v44 = vld [vmem:[%s873_s7 + $0x38] sm:$0xff]  }
  0x2f   :  { %543 = vmatmul.mubr.msk.bf16.vlgmr.msra.gmra.mrb[0].mxu0 %vm86_vm1, %v62_v5  ;;  %v481_v35 = vld [vmem:[%s870_s4] ss:$0 sm:$0xff] }
  0x30   :  { %582 = vmatprep.mubr.msk.bf16.mxu0 %vm691_vm0, %v690_v0  ;;  %551 = vmatpush3.bf16.msra.mxu1 %v616_v7  ;;  %v490_v45 = vld [vmem:[%s872_s6] ss:$0 sm:$0xff] }
  0x31   :  { %552 = vmatprep.subr.bf16.mxu1 %v690_v0  ;;  %567 = vmatpush3.bf16.msra.mxu0 %v622_v13  ;;  %v499_v53 = vld [vmem:[%s874_s8] ss:$0 sm:$0xff] }
  0x32   :  { %568 = vmatprep.subr.bf16.mxu0 %v690_v0 }
  0x34   :  { %553 = vmatpush3.bf16.msra.mxu1 %v617_v8 }
  0x35   :  { %554 = vmatprep.subr.bf16.mxu1 %v690_v0  ;;  %569 = vmatpush3.bf16.msra.mxu0 %v623_v14 }
  0x36   :  { %570 = vmatprep.subr.bf16.mxu0 %v690_v0 }
  0x38   :  { %555 = vmatpush3.bf16.msra.mxu1 %v618_v9 }
  0x39   :  { %556 = vmatprep.subr.bf16.mxu1 %v690_v0  ;;  %571 = vmatpush3.bf16.msra.mxu0 %v624_v15 }
  0x3a   :  { %572 = vmatprep.subr.bf16.mxu0 %v690_v0 }
  0x3c   :  { %557 = vmatpush3.bf16.msra.mxu1 %v619_v10 }
  0x3d   :  { %558 = vmatprep.subr.bf16.mxu1 %v690_v0  ;;  %573 = vmatpush3.bf16.msra.mxu0 %v625_v16 }
  0x3e   :  { %574 = vmatprep.subr.bf16.mxu0 %v690_v0 }
  0x40   :  { %559 = vmatpush3.bf16.msra.mxu1 %v620_v11 }
  0x41   :  { %560 = vmatprep.subr.bf16.mxu1 %v690_v0  ;;  %575 = vmatpush3.bf16.msra.mxu0 %v626_v17 }
  0x42   :  { %576 = vmatprep.subr.bf16.mxu0 %v690_v0 }
  0x44   :  { %561 = vmatpush3.bf16.msra.mxu1 %v621_v12 }
  0x45   :  { %586 = vmatprep.subr.bf16.mxu1 %v690_v0  ;;  %577 = vmatpush3.bf16.msra.mxu0 %v627_v18 }
  0x46   :  { %578 = vmatprep.subr.bf16.mxu0 %v690_v0 }
  0x49   :  { %579 = vmatpush3.bf16.msra.mxu0 %v628_v27 }
  0x4a   :  { %580 = vmatprep.subr.bf16.mxu0 %v690_v0 }
  0x4d   :  { %581 = vmatpush3.bf16.msra.mxu0 %v629_v28 }
 0x102   :  { %v124_v20 = vpop.f32.mrb[0].mxu0 }
 0x103   :  { %v125_v21 = vadd.f32 %v477_v19, %v124_v20  ;;  %v544_v22 = vpop.f32.mrb[1].mxu0 }
 0x104   :  { %v127_v23 = vpop.f32.mrb[2].mxu0 }
 0x105   :  { %v130_v24 = vmax.f32 %v125_v21, 0.0  ;;  %v545_v25 = vpop.f32.mrb[3].mxu0 }
 0x107   :  { %v131_v26 = vpack.c.bf16 %v130_v24, %v130_v24 }
 0x109   :  { %563 = vmatmul.mubr.bf16.vlgmr.msra.gmra.mrb[0].mxu1 %v131_v26 }
 0x10a   :  { %602 = vmatprep.mubr.msk.bf16.mxu1 %vm691_vm0, %v690_v0  ;;  %587 = vmatpush3.bf16.msra.mxu1 %v630_v29 }
 0x10b   :  { %588 = vmatprep.subr.bf16.mxu1 %v690_v0 }
 0x10e   :  { %589 = vmatpush3.bf16.msra.mxu1 %v631_v30 }
 0x10f   :  { %590 = vmatprep.subr.bf16.mxu1 %v690_v0 }
 0x112   :  { %591 = vmatpush3.bf16.msra.mxu1 %v632_v31 }
 0x113   :  { %592 = vmatprep.subr.bf16.mxu1 %v690_v0 }
 0x116   :  { %593 = vmatpush3.bf16.msra.mxu1 %v633_v32 }
 0x117   :  { %594 = vmatprep.subr.bf16.mxu1 %v690_v0 }
 0x11a   :  { %595 = vmatpush3.bf16.msra.mxu1 %v634_v33 }
 0x11b   :  { %596 = vmatprep.subr.bf16.mxu1 %v690_v0 }
 0x11e   :  { %597 = vmatpush3.bf16.msra.mxu1 %v635_v34 }
 0x11f   :  { %598 = vmatprep.subr.bf16.mxu1 %v690_v0 }
 0x122   :  { %599 = vmatpush3.bf16.msra.mxu1 %v636_v43 }
 0x123   :  { %600 = vmatprep.subr.bf16.mxu1 %v690_v0 }
 0x126   :  { %601 = vmatpush3.bf16.msra.mxu1 %v637_v44 }
 0x1dc   :  { %v237_v36 = vpop.f32.mrb[0].mxu1 }
 0x1dd   :  { %v238_v37 = vadd.f32 %v481_v35, %v237_v36  ;;  %v564_v38 = vpop.f32.mrb[1].mxu1 }
 0x1de   :  { %v240_v39 = vpop.f32.mrb[2].mxu1 }
 0x1df   :  { %v243_v40 = vmax.f32 %v238_v37, 0.0  ;;  %v565_v41 = vpop.f32.mrb[3].mxu1 }
 0x1e1   :  { %v244_v42 = vpack.c.bf16 %v243_v40, %v243_v40 }
 0x1e3   :  { %583 = vmatmul.mubr.bf16.vlgmr.msra.gmra.mrb[4].mxu0 %v244_v42 }
 0x2b6   :  { %v350_v46 = vpop.f32.mrb[4].mxu0 }
 0x2b7   :  { %v351_v47 = vadd.f32 %v490_v45, %v350_v46  ;;  %v584_v48 = vpop.f32.mrb[5].mxu0 }
 0x2b8   :  { %v353_v49 = vpop.f32.mrb[6].mxu0 }
 0x2b9   :  { %v356_v50 = vmax.f32 %v351_v47, 0.0  ;;  %v585_v51 = vpop.f32.mrb[7].mxu0 }
 0x2bb   :  { %v357_v52 = vpack.c.bf16 %v356_v50, %v356_v50 }
 0x2bd   :  { %603 = vmatmul.mubr.bf16.vlgmr.msra.gmra.mrb[4].mxu1 %v357_v52 }
 0x390   :  { %v463_v54 = vpop.f32.mrb[4].mxu1 }
 0x391   :  { %v464_v55 = vadd.f32 %v499_v53, %v463_v54  ;;  %v604_v56 = vpop.f32.mrb[5].mxu1 }
 0x392   :  { %v466_v57 = vpop.f32.mrb[6].mxu1 }
 0x393   :  { %470 = vst.msk [vmem:[%s875_s9] sm:$0xff] %vm469_vm2, %v464_v55  ;;  %v605_v58 = vpop.f32.mrb[7].mxu1 }
 0x394   :  { %475 = vsyncpa [#allocation3], 1 }
 0x395   :  { %476 = vsyncpa [#allocation5], 1 }

</bundles_post_ra>
